<compile_context>
chip_gen: v6e
topology: v6e:2x2x1
jax: 0.10.0
libtpu: 0.0.40
codegen_flags: <defaults>
</compile_context>

<pallas_src>
import jax
import jax.numpy as jnp
from jax.experimental import pallas as pl
from jax.experimental.pallas import tpu as pltpu

BN_EPS = 1e-5
_BIAS_LANES = 128  # bias slab lane width (max layer width)


# --------------------------------------------------------------------------
# Kernel: 4 x (dot + bias [+ ReLU]).  BatchNorm already folded into weights.
# --------------------------------------------------------------------------
def gaze_mlp_kernel(x_ref, w1_ref, w2_ref, w3_ref, w4_ref, b_ref, o_ref):
    def layer(h_bf16, w_ref, bias_row, relu):
        d = w_ref.shape[1]
        # MXU matmul, f32 accumulation.
        y = jnp.dot(h_bf16, w_ref[...], preferred_element_type=jnp.float32)
        # Bias add + ReLU stay in f32 (v5e has no bf16 VPU path).
        y = y + b_ref[bias_row:bias_row + 1, :d]
        if relu:
            y = jnp.maximum(y, 0.0).astype(jnp.bfloat16)  # cast only at dot boundary
        return y

    # In-kernel bf16 cast of the x tile (replaces the old wrapper-side pass).
    h = layer(x_ref[...].astype(jnp.bfloat16), w1_ref, 0, relu=True)
    h = layer(h, w2_ref, 1, relu=True)
    h = layer(h, w3_ref, 2, relu=True)
    # Final Linear(32->2), f32 out.  (TB, 2) store is lane-masked; packing it
    # lane-dense would need an in-kernel (TB,2)->(TB//64,128) relayout.
    # TODO(synk): revisit lane-dense output packing if Mosaic shape-cast
    #             support for this pattern is confirmed; impact is modest
    #             (~TB/8 masked vst per step vs 4*TB/8 MXU pushes).
    o_ref[...] = layer(h, w4_ref, 3, relu=False)


# --------------------------------------------------------------------------
# Batch-tile selection.
# --------------------------------------------------------------------------
def _pick_batch_tile(B, tb):
    """Tile = full array for small B; else a multiple of 256, capped so the
    grid keeps ~>=8 steps when B permits (v7x 2-TC pipelining) and <=4096
    (VMEM-safe on every gen without raising vmem_limit_bytes)."""
    if B <= 256:
        return B
    eight_step_cap = pl.cdiv(pl.cdiv(B, 8), 256) * 256
    return min(tb, eight_step_cap, 4096)


# --------------------------------------------------------------------------
# Wrapper: batch-gridded pallas_call with resident (bf16) weights.
# --------------------------------------------------------------------------
def gaze_prediction_forward(x, weights, bias_pack, *, tb=2048):
    """x: (B, 6) float32.  weights: 4 bf16 (in,out) mats.  bias_pack: (4,128) f32."""
    w1, w2, w3, w4 = weights
    B = x.shape[0]
    TB = _pick_batch_tile(B, tb)
    n_steps = pl.cdiv(B, TB)

    flops = 2 * B * (6 * 128 + 128 * 64 + 64 * 32 + 32 * 2)
    bytes_accessed = (
        x.size * 4                           # f32 x in (read directly, no wrapper cast)
        + B * 2 * 4                          # f32 out
        + sum(w.size for w in weights) * 2   # bf16 weights (resident)
        + bias_pack.size * 4                 # f32 bias slab
    )

    grid_spec = pltpu.PrefetchScalarGridSpec(
        num_scalar_prefetch=0,
        grid=(n_steps,),
        in_specs=[
            pl.BlockSpec((TB, 6), lambda i: (i, 0)),
            # Grid-invariant blocks: stay resident in VMEM across steps.
            pl.BlockSpec(w1.shape, lambda i: (0, 0)),
            pl.BlockSpec(w2.shape, lambda i: (0, 0)),
            pl.BlockSpec(w3.shape, lambda i: (0, 0)),
            pl.BlockSpec(w4.shape, lambda i: (0, 0)),
            pl.BlockSpec(bias_pack.shape, lambda i: (0, 0)),
        ],
        # Partial last block (B % TB != 0) is masked by Pallas on writeback.
        out_specs=pl.BlockSpec((TB, 2), lambda i: (i, 0)),
    )

    return pl.pallas_call(
        gaze_mlp_kernel,
        out_shape=jax.ShapeDtypeStruct((B, 2), jnp.float32),
        grid_spec=grid_spec,
        compiler_params=pltpu.CompilerParams(
            dimension_semantics=("parallel",)),
        cost_estimate=pl.CostEstimate(
            flops=flops, bytes_accessed=bytes_accessed, transcendentals=0),
    )(x, w1, w2, w3, w4, bias_pack)


# --------------------------------------------------------------------------
# Parameter prep: synthetic PyTorch-shaped params + exact eval-mode BN folding.
# --------------------------------------------------------------------------
def init_params(key, hidden_size=128):
    """Deterministic synthetic parameters matching the module's shapes."""
    sizes = [6, hidden_size, hidden_size // 2, hidden_size // 4, 2]
    params = []
    k = key
    for li in range(4):
        fan_in, fan_out = sizes[li], sizes[li + 1]
        k, kw, kb = jax.random.split(k, 3)
        bound = 1.0 / jnp.sqrt(jnp.float32(fan_in))
        # PyTorch Linear weight is (out, in); store transposed (in, out).
        w = jax.random.uniform(kw, (fan_in, fan_out), jnp.float32, -bound, bound)
        b = jax.random.uniform(kb, (1, fan_out), jnp.float32, -bound, bound)
        params.append(w)
        params.append(b)
        if li < 3:
            k, kg, kbeta, km, kv = jax.random.split(k, 5)
            gamma = 1.0 + 0.1 * jax.random.normal(kg, (1, fan_out), jnp.float32)
            beta = 0.1 * jax.random.normal(kbeta, (1, fan_out), jnp.float32)
            mean = 0.1 * jax.random.normal(km, (1, fan_out), jnp.float32)
            var = 1.0 + 0.1 * jax.random.uniform(kv, (1, fan_out), jnp.float32)
            params.extend([gamma, beta, mean, var])
    return params


def fold_params(params):
    """Fold eval-mode BatchNorms into the following Linear layers (f32),
    then cast weights to bf16 and pack biases into one (4,128) f32 slab."""
    (w1, b1, g1, be1, m1, v1,
     w2, b2, g2, be2, m2, v2,
     w3, b3, g3, be3, m3, v3,
     w4, b4) = params

    def bn_scale_shift(g, be, m, v):
        s = g * jax.lax.rsqrt(v + BN_EPS)   # (1, C)
        t = be - m * s                      # (1, C)
        return s, t

    s1, t1 = bn_scale_shift(g1, be1, m1, v1)
    s2, t2 = bn_scale_shift(g2, be2, m2, v2)
    s3, t3 = bn_scale_shift(g3, be3, m3, v3)

    # BN(ReLU(z)) @ W + b  ==  ReLU(z) @ (s^T * W) + (t @ W + b)
    w2f, b2f = w2 * s1.reshape(-1, 1), b2 + t1 @ w2
    w3f, b3f = w3 * s2.reshape(-1, 1), b3 + t2 @ w3
    w4f, b4f = w4 * s3.reshape(-1, 1), b4 + t3 @ w4

    weights = [w.astype(jnp.bfloat16) for w in (w1, w2f, w3f, w4f)]
    biases = [b1, b2f, b3f, b4f]  # kept f32 (added on the f32 accumulator)

    bias_pack = jnp.zeros((4, _BIAS_LANES), jnp.float32)
    for i, b in enumerate(biases):
        bias_pack = bias_pack.at[i, : b.shape[1]].set(b[0])
    return weights, biases, bias_pack


# --------------------------------------------------------------------------
# References.
# --------------------------------------------------------------------------
def reference_forward(x, params):
    """Original eval-mode forward in pure f32 (unfolded BN)."""
    (w1, b1, g1, be1, m1, v1,
     w2, b2, g2, be2, m2, v2,
     w3, b3, g3, be3, m3, v3,
     w4, b4) = params

    def block(h, w, b, g, be, m, v):
        y = jnp.maximum(h @ w + b, 0.0)
        return (y - m) / jnp.sqrt(v + BN_EPS) * g + be

    h = block(x, w1, b1, g1, be1, m1, v1)
    h = block(h, w2, b2, g2, be2, m2, v2)
    h = block(h, w3, b3, g3, be3, m3, v3)
    return h @ w4 + b4


def folded_reference(x, weights, biases):
    """Mirrors the kernel's math exactly (folded BN, bf16 dots, f32 accumulate)."""
    h = x
    for idx, (w, b) in enumerate(zip(weights, biases)):
        h = jnp.dot(h.astype(jnp.bfloat16), w,
                    preferred_element_type=jnp.float32) + b
        if idx < 3:
            h = jnp.maximum(h, 0.0)
    return h


# --------------------------------------------------------------------------
if __name__ == "__main__":
    key = jax.random.PRNGKey(0)
    k_params, k_x1, k_x2 = jax.random.split(key, 3)

    hidden_size = 128
    params = init_params(k_params, hidden_size=hidden_size)
    weights, biases, bias_pack = fold_params(params)

    # Small batch: single full-array block, grid of 1.
    x_small = jax.random.normal(k_x1, (8, 6), jnp.float32)
    out_small = jax.block_until_ready(
        gaze_prediction_forward(x_small, weights, bias_pack))
    assert out_small.shape == (8, 2), out_small.shape

    # Larger, non-divisible batch: exercises the multi-step grid and the
    # masked partial last block (no wrapper-side padding anymore).
    x_big = jax.random.normal(k_x2, (1000, 6), jnp.float32)
    out_big = jax.block_until_ready(
        gaze_prediction_forward(x_big, weights, bias_pack))
    assert out_big.shape == (1000, 2), out_big.shape

    for x, out in ((x_small, out_small), (x_big, out_big)):
        # Tight check vs a reference that mirrors the kernel's quantization.
        tight = folded_reference(x, weights, biases)
        assert jnp.allclose(out, tight, atol=2e-3, rtol=2e-3), (
            float(jnp.max(jnp.abs(out - tight))))
        # Loose check vs the original f32 eval-mode semantics (bf16 error budget).
        loose = reference_forward(x, params)
        assert jnp.allclose(out, loose, atol=7.5e-2, rtol=5e-2), (
            float(jnp.max(jnp.abs(out - loose))))

    print("KERNEL_OK")
</pallas_src>

<mosaic_0001>
module attributes {stable_mosaic.version = 11 : i64} {
  func.func @gaze_mlp_kernel(%arg0: i32, %arg1: memref<8x6xf32, #tpu.memory_space<vmem>>, %arg2: memref<6x128xbf16, #tpu.memory_space<vmem>>, %arg3: memref<128x64xbf16, #tpu.memory_space<vmem>>, %arg4: memref<64x32xbf16, #tpu.memory_space<vmem>>, %arg5: memref<32x2xbf16, #tpu.memory_space<vmem>>, %arg6: memref<4x128xf32, #tpu.memory_space<vmem>>, %arg7: memref<8x2xf32, #tpu.memory_space<vmem>>) attributes {dimension_semantics = [#tpu.dimension_semantics<parallel>], iteration_bounds = array<i64: 1>, scalar_prefetch = 0 : i64, scratch_operands = 0 : i64, tpu.core_type = #tpu.core_type<tc>, window_params = [{transform_indices = @transform_0, window_bounds = array<i64: 8, 6>}, {pipeline_mode = #tpu.pipeline_mode<synchronous>, transform_indices = @transform_1, window_bounds = array<i64: 6, 128>}, {pipeline_mode = #tpu.pipeline_mode<synchronous>, transform_indices = @transform_2, window_bounds = array<i64: 128, 64>}, {pipeline_mode = #tpu.pipeline_mode<synchronous>, transform_indices = @transform_3, window_bounds = array<i64: 64, 32>}, {pipeline_mode = #tpu.pipeline_mode<synchronous>, transform_indices = @transform_4, window_bounds = array<i64: 32, 2>}, {pipeline_mode = #tpu.pipeline_mode<synchronous>, transform_indices = @transform_5, window_bounds = array<i64: 4, 128>}, {transform_indices = @transform_6, window_bounds = array<i64: 8, 2>}]} {
    %c0 = arith.constant 0 : index
    %c0_0 = arith.constant 0 : index
    %0 = vector.load %arg1[%c0, %c0_0] : memref<8x6xf32, #tpu.memory_space<vmem>>, vector<8x6xf32>
    %1 = arith.truncf %0 : vector<8x6xf32> to vector<8x6xbf16>
    %c0_1 = arith.constant 0 : index
    %c0_2 = arith.constant 0 : index
    %2 = vector.load %arg2[%c0_1, %c0_2] : memref<6x128xbf16, #tpu.memory_space<vmem>>, vector<6x128xbf16>
    %cst = arith.constant dense<0.000000e+00> : vector<8x128xf32>
    %3 = tpu.matmul %1, %2, %cst {dimension_numbers = #tpu.dot_dimension_numbers<[1], [0], [0], [1], [0, 0, 1, 1], [], []>} : vector<8x6xbf16>, vector<6x128xbf16>, vector<8x128xf32> -> vector<8x128xf32>
    %c0_3 = arith.constant 0 : index
    %c0_4 = arith.constant 0 : index
    %4 = vector.load %arg6[%c0_3, %c0_4] : memref<4x128xf32, #tpu.memory_space<vmem>>, vector<1x128xf32>
    %5 = vector.broadcast %4 : vector<1x128xf32> to vector<8x128xf32>
    %6 = arith.addf %3, %5 : vector<8x128xf32>
    %cst_5 = arith.constant 0.000000e+00 : f32
    %7 = vector.broadcast %cst_5 : f32 to vector<8x128xf32>
    %8 = arith.maximumf %6, %7 : vector<8x128xf32>
    %9 = arith.truncf %8 : vector<8x128xf32> to vector<8x128xbf16>
    %c0_6 = arith.constant 0 : index
    %c0_7 = arith.constant 0 : index
    %10 = vector.load %arg3[%c0_6, %c0_7] : memref<128x64xbf16, #tpu.memory_space<vmem>>, vector<128x64xbf16>
    %cst_8 = arith.constant dense<0.000000e+00> : vector<8x64xf32>
    %11 = tpu.matmul %9, %10, %cst_8 {dimension_numbers = #tpu.dot_dimension_numbers<[1], [0], [0], [1], [0, 0, 1, 1], [], []>} : vector<8x128xbf16>, vector<128x64xbf16>, vector<8x64xf32> -> vector<8x64xf32>
    %c1 = arith.constant 1 : index
    %c0_9 = arith.constant 0 : index
    %12 = vector.load %arg6[%c1, %c0_9] : memref<4x128xf32, #tpu.memory_space<vmem>>, vector<1x64xf32>
    %13 = vector.broadcast %12 : vector<1x64xf32> to vector<8x64xf32>
    %14 = arith.addf %11, %13 : vector<8x64xf32>
    %cst_10 = arith.constant 0.000000e+00 : f32
    %15 = vector.broadcast %cst_10 : f32 to vector<8x64xf32>
    %16 = arith.maximumf %14, %15 : vector<8x64xf32>
    %17 = arith.truncf %16 : vector<8x64xf32> to vector<8x64xbf16>
    %c0_11 = arith.constant 0 : index
    %c0_12 = arith.constant 0 : index
    %18 = vector.load %arg4[%c0_11, %c0_12] : memref<64x32xbf16, #tpu.memory_space<vmem>>, vector<64x32xbf16>
    %cst_13 = arith.constant dense<0.000000e+00> : vector<8x32xf32>
    %19 = tpu.matmul %17, %18, %cst_13 {dimension_numbers = #tpu.dot_dimension_numbers<[1], [0], [0], [1], [0, 0, 1, 1], [], []>} : vector<8x64xbf16>, vector<64x32xbf16>, vector<8x32xf32> -> vector<8x32xf32>
    %c2 = arith.constant 2 : index
    %c0_14 = arith.constant 0 : index
    %20 = vector.load %arg6[%c2, %c0_14] : memref<4x128xf32, #tpu.memory_space<vmem>>, vector<1x32xf32>
    %21 = vector.broadcast %20 : vector<1x32xf32> to vector<8x32xf32>
    %22 = arith.addf %19, %21 : vector<8x32xf32>
    %cst_15 = arith.constant 0.000000e+00 : f32
    %23 = vector.broadcast %cst_15 : f32 to vector<8x32xf32>
    %24 = arith.maximumf %22, %23 : vector<8x32xf32>
    %25 = arith.truncf %24 : vector<8x32xf32> to vector<8x32xbf16>
    %c0_16 = arith.constant 0 : index
    %c0_17 = arith.constant 0 : index
    %26 = vector.load %arg5[%c0_16, %c0_17] : memref<32x2xbf16, #tpu.memory_space<vmem>>, vector<32x2xbf16>
    %cst_18 = arith.constant dense<0.000000e+00> : vector<8x2xf32>
    %27 = tpu.matmul %25, %26, %cst_18 {dimension_numbers = #tpu.dot_dimension_numbers<[1], [0], [0], [1], [0, 0, 1, 1], [], []>} : vector<8x32xbf16>, vector<32x2xbf16>, vector<8x2xf32> -> vector<8x2xf32>
    %c3 = arith.constant 3 : index
    %c0_19 = arith.constant 0 : index
    %28 = vector.load %arg6[%c3, %c0_19] : memref<4x128xf32, #tpu.memory_space<vmem>>, vector<1x2xf32>
    %29 = vector.broadcast %28 : vector<1x2xf32> to vector<8x2xf32>
    %30 = arith.addf %27, %29 : vector<8x2xf32>
    %c0_20 = arith.constant 0 : index
    %c0_21 = arith.constant 0 : index
    %31 = vector.load %arg7[%c0_20, %c0_21] : memref<8x2xf32, #tpu.memory_space<vmem>>, vector<8x2xf32>
    tpu.vector_store %arg7[%c0_20, %c0_21], %30 {strides = array<i32>} : memref<8x2xf32, #tpu.memory_space<vmem>>, vector<8x2xf32>,
    return
  }
  func.func @transform_0(%arg0: i32) -> (i32, i32) {
    %c0_i32 = arith.constant 0 : i32
    %c0_i32_0 = arith.constant 0 : i32
    return %arg0, %c0_i32 : i32, i32
  }
  func.func @transform_1(%arg0: i32) -> (i32, i32) {
    %c0_i32 = arith.constant 0 : i32
    %c0_i32_0 = arith.constant 0 : i32
    %c0_i32_1 = arith.constant 0 : i32
    return %c0_i32, %c0_i32_0 : i32, i32
  }
  func.func @transform_2(%arg0: i32) -> (i32, i32) {
    %c0_i32 = arith.constant 0 : i32
    %c0_i32_0 = arith.constant 0 : i32
    %c0_i32_1 = arith.constant 0 : i32
    return %c0_i32, %c0_i32_0 : i32, i32
  }
  func.func @transform_3(%arg0: i32) -> (i32, i32) {
    %c0_i32 = arith.constant 0 : i32
    %c0_i32_0 = arith.constant 0 : i32
    %c0_i32_1 = arith.constant 0 : i32
    return %c0_i32, %c0_i32_0 : i32, i32
  }
  func.func @transform_4(%arg0: i32) -> (i32, i32) {
    %c0_i32 = arith.constant 0 : i32
    %c0_i32_0 = arith.constant 0 : i32
    %c0_i32_1 = arith.constant 0 : i32
    return %c0_i32, %c0_i32_0 : i32, i32
  }
  func.func @transform_5(%arg0: i32) -> (i32, i32) {
    %c0_i32 = arith.constant 0 : i32
    %c0_i32_0 = arith.constant 0 : i32
    %c0_i32_1 = arith.constant 0 : i32
    return %c0_i32, %c0_i32_0 : i32, i32
  }
  func.func @transform_6(%arg0: i32) -> (i32, i32) {
    %c0_i32 = arith.constant 0 : i32
    %c0_i32_0 = arith.constant 0 : i32
    return %arg0, %c0_i32 : i32, i32
  }
}

</mosaic_0001>

<bundles_post_ra>
// kernel: tpu_custom_call.1
= control target key start
LH: loop header
LB: loop body
LE: loop exit
PB: predicated region body
PF: predicated region fallthrough
CT: control target
= control target key end

     0   :  { %vm36_vm0 = vcmask 1042432   ;;  %v449_v0 = vmov 0.0   ;;  %vm450_vm1 = vmmov 0   ;;  %vm32_vm2 = vcmask 48128   ;;  %s572_s1 = inlined_call_operand.vmem [shape: bf16[6,128], index: 1, kind: input, shape index: {}]   ;;  %s573_s0 = inlined_call_operand.vmem [shape: f32[8,6], index: 0, kind: input, shape index: {}]   ;;  %s574_s2 = inlined_call_operand.vmem [shape: bf16[128,64], index: 2, kind: input, shape index: {}]   ;;  %s575_s3 = inlined_call_operand.vmem [shape: bf16[64,32], index: 3, kind: input, shape index: {}]   ;;  %s576_s5 = inlined_call_operand.vmem [shape: f32[4,128], index: 5, kind: input, shape index: {}]   ;;  %s577_s4 = inlined_call_operand.vmem [shape: bf16[32,2], index: 4, kind: input, shape index: {}]   ;;  %s578_s6 = inlined_call_operand.vmem [shape: f32[8,2], index: 6, kind: output, shape index: {}]  }
   0x1   :  { %387 = vmatprep.subr.bf16.mxu0 %v449_v0  ;;  %v26_v1 = vld [vmem:[%s572_s1] sm:$0x7]  ;;  %389 = vmatprep.mubr.msk.bf16.mxu0 %vm450_vm1, %v449_v0  ;;  %v435_v5 = vld [vmem:[%s574_s2 + $0x38] sm:$0xff]   ;;  %v436_v6 = vld [vmem:[%s574_s2 + $0x30] sm:$0xff]   ;;  %vm230_vm3 = vcmask 523264   ;;  %vm297_vm4 = vcmask 261120  }
   0x2   :  { %v24_v2 = vld [vmem:[%s573_s0] sm:$0xff]  ;;  %v38_v3 = vsel %vm36_vm0, %v26_v1, 0  ;;  %393 = vmatprep.subr.bf16.mxu1 %v449_v0  ;;  %409 = vmatprep.mubr.msk.bf16.mxu1 %vm450_vm1, %v449_v0  ;;  %v437_v7 = vld [vmem:[%s574_s2 + $0x28] sm:$0xff]   ;;  %v439_v9 = vld [vmem:[%s574_s2 + $0x18] sm:$0xff]   ;;  %vm341_vm5 = vcmask 15360  }
   0x3   :  { %v25_v4 = vpack.c.bf16 %v24_v2, %v24_v2  ;;  %388 = vmatpush3.bf16.msra.mxu0 %v38_v3  ;;  %394 = vmatpush3.bf16.msra.mxu1 %v435_v5  ;;  %v438_v8 = vld [vmem:[%s574_s2 + $0x20] sm:$0xff]   ;;  %v440_v10 = vld [vmem:[%s574_s2 + $0x10] sm:$0xff]   ;;  %v441_v11 = vld [vmem:[%s574_s2 + $0x8] sm:$0xff]  }
   0x4   :  { %413 = vmatprep.subr.bf16.mxu0 %v449_v0  ;;  %395 = vmatprep.subr.bf16.mxu1 %v449_v0  ;;  %v442_v12 = vld [vmem:[%s574_s2] sm:$0xff]   ;;  %v443_v13 = vld [vmem:[%s575_s3 + $0x18] sm:$0xff]   ;;  %v444_v14 = vld [vmem:[%s575_s3 + $0x10] sm:$0xff]  }
   0x5   :  { %v347_v15 = vld [vmem:[%s576_s5] ss:$0 sm:$0xff]  ;;  %v445_v23 = vld [vmem:[%s575_s3 + $0x8] sm:$0xff]   ;;  %v349_v25 = vld [vmem:[%s576_s5 + $0x1] ss:$0 sm:$0xff] }
   0x6   :  { %390 = vmatmul.mubr.msk.bf16.vlgmr.msra.gmra.mxu0 %vm32_vm2, %v25_v4  ;;  %v446_v24 = vld [vmem:[%s575_s3] sm:$0xff]   ;;  %v447_v31 = vld [vmem:[%s577_s4 + $0x8] sm:$0xff]  }
   0x7   :  { %421 = vmatprep.mubr.msk.bf16.mxu0 %vm450_vm1, %v449_v0  ;;  %396 = vmatpush3.bf16.msra.mxu1 %v436_v6  ;;  %v448_v34 = vld [vmem:[%s577_s4] sm:$0xff]  }
   0x8   :  { %397 = vmatprep.subr.bf16.mxu1 %v449_v0  ;;  %414 = vmatpush3.bf16.msra.mxu0 %v443_v13  ;;  %v358_v35 = vld [vmem:[%s576_s5 + $0x2] ss:$0 sm:$0xff]  ;;  %v364_v43 = vld [vmem:[%s576_s5 + $0x3] ss:$0 sm:$0xff] }
   0x9   :  { %415 = vmatprep.subr.bf16.mxu0 %v449_v0 }
   0xb   :  { %398 = vmatpush3.bf16.msra.mxu1 %v437_v7 }
   0xc   :  { %399 = vmatprep.subr.bf16.mxu1 %v449_v0  ;;  %416 = vmatpush3.bf16.msra.mxu0 %v444_v14 }
   0xd   :  { %417 = vmatprep.subr.bf16.mxu0 %v449_v0 }
   0xf   :  { %400 = vmatpush3.bf16.msra.mxu1 %v438_v8 }
  0x10   :  { %401 = vmatprep.subr.bf16.mxu1 %v449_v0  ;;  %418 = vmatpush3.bf16.msra.mxu0 %v445_v23 }
  0x11   :  { %419 = vmatprep.subr.bf16.mxu0 %v449_v0 }
  0x13   :  { %402 = vmatpush3.bf16.msra.mxu1 %v439_v9 }
  0x14   :  { %403 = vmatprep.subr.bf16.mxu1 %v449_v0  ;;  %420 = vmatpush3.bf16.msra.mxu0 %v446_v24 }
  0x15   :  { %425 = vmatprep.subr.bf16.mxu0 %v449_v0 }
  0x17   :  { %404 = vmatpush3.bf16.msra.mxu1 %v440_v10 }
  0x18   :  { %405 = vmatprep.subr.bf16.mxu1 %v449_v0 }
  0x1b   :  { %406 = vmatpush3.bf16.msra.mxu1 %v441_v11 }
  0x1c   :  { %407 = vmatprep.subr.bf16.mxu1 %v449_v0 }
  0x1f   :  { %408 = vmatpush3.bf16.msra.mxu1 %v442_v12 }
  0xc6   :  { %v74_v16 = vpop.f32.mrf.mxu0 }
  0xc7   :  { %v75_v17 = vadd.f32 %v347_v15, %v74_v16 }
  0xc8   :  { %v391_v18 = vpop.f32.mrf.mxu0 }
  0xc9   :  { %v80_v19 = vmax.f32 %v75_v17, 0.0 }
  0xca   :  { %v77_v20 = vpop.f32.mrf.mxu0 }
  0xcb   :  { %v81_v21 = vpack.c.bf16 %v80_v19, %v80_v19 }
  0xcc   :  { %v392_v22 = vpop.f32.mrf.mxu0 }
  0xcd   :  { %410 = vmatmul.mubr.bf16.vlgmr.msra.gmra.mxu1 %v81_v21 }
 0x18d   :  { %v185_v26 = vpop.f32.mrf.mxu1 }
 0x18e   :  { %v186_v27 = vadd.f32 %v349_v25, %v185_v26 }
 0x18f   :  { %v411_v28 = vpop.f32.mrf.mxu1 }
 0x190   :  { %v191_v29 = vmax.f32 %v186_v27, 0.0 }
 0x191   :  { %v188_v30 = vpop.f32.mrf.mxu1 }
 0x192   :  { %v192_v32 = vpack.c.bf16 %v191_v29, %v191_v29 }
 0x193   :  { %v412_v33 = vpop.f32.mrf.mxu1 }
 0x194   :  { %422 = vmatmul.mubr.msk.bf16.vlgmr.msra.gmra.mxu0 %vm230_vm3, %v192_v32 }
 0x195   :  { %426 = vmatpush3.bf16.msra.mxu0 %v447_v31  ;;  %429 = vmatprep.mubr.msk.bf16.mxu0 %vm450_vm1, %v449_v0 }
 0x196   :  { %427 = vmatprep.subr.bf16.mxu0 %v449_v0 }
 0x199   :  { %428 = vmatpush3.bf16.msra.mxu0 %v448_v34 }
 0x254   :  { %v268_v36 = vpop.f32.mrf.mxu0 }
 0x255   :  { %v269_v37 = vadd.f32 %v358_v35, %v268_v36 }
 0x256   :  { %v423_v38 = vpop.f32.mrf.mxu0 }
 0x257   :  { %v274_v39 = vmax.f32 %v269_v37, 0.0 }
 0x258   :  { %v271_v40 = vpop.f32.mrf.mxu0 }
 0x259   :  { %v275_v41 = vpack.c.bf16 %v274_v39, %v274_v39 }
 0x25a   :  { %v424_v42 = vpop.f32.mrf.mxu0 }
 0x25b   :  { %430 = vmatmul.mubr.msk.bf16.vlgmr.msra.gmra.mxu0 %vm297_vm4, %v275_v41 }
 0x31b   :  { %v335_v44 = vpop.f32.mrf.mxu0 }
 0x31c   :  { %v336_v45 = vadd.f32 %v364_v43, %v335_v44 }
 0x31d   :  { %v431_v46 = vpop.f32.mrf.mxu0 }
 0x31e   :  { %342 = vst.msk [vmem:[%s578_s6] sm:$0xff] %vm341_vm5, %v336_v45 }
 0x31f   :  { %v338_v47 = vpop.f32.mrf.mxu0 }
 0x321   :  { %v432_v48 = vpop.f32.mrf.mxu0 }

</bundles_post_ra>
